<compile_context>
chip_gen: v7x
topology: tpu7x:2x2x1
jax: 0.10.0
libtpu: 0.0.40
codegen_flags: <defaults>
</compile_context>

<pallas_src>
import functools
import math

import jax
import jax.numpy as jnp
from jax.experimental import pallas as pl
from jax.experimental.pallas import tpu as pltpu


def _round_up(x: int, m: int) -> int:
    return ((x + m - 1) // m) * m


def _rmsnorm_kernel(x_ref, g_ref, *rest, eps: float, d_model: int, pack: int):
    # x_ref: (TR, W) with W = pack * d_model; g_ref: (1, W)
    # rest = (seg_ref, o_ref) when pack > 1 else (o_ref,)
    o_ref = rest[-1]
    x = x_ref[...].astype(jnp.float32)
    xx = x * x
    if pack == 1:
        # One logical row per physical row: plain lane-axis reduction.
        ms = jnp.sum(xx, axis=-1, keepdims=True) * (1.0 / d_model) + eps
    else:
        # `pack` logical rows share the lane axis.  Per-segment sums (and the
        # broadcast back within each segment) come from a 0/1 block-diagonal
        # matmul on the idle MXU.  xx is decomposed into three exact bf16
        # terms so each pass is a single native bf16 matmul with f32
        # accumulation (f32-accurate, but only 3 MXU passes -- matters for
        # v5e headroom; garbage rows of a partial last block only contaminate
        # themselves and their writes are dropped).
        seg_ref = rest[0]
        seg = seg_ref[...]  # bf16, entries exactly 0.0 / 1.0
        t0 = xx.astype(jnp.bfloat16)
        r0 = xx - t0.astype(jnp.float32)
        t1 = r0.astype(jnp.bfloat16)
        r1 = r0 - t1.astype(jnp.float32)
        t2 = r1.astype(jnp.bfloat16)
        ss = (jnp.dot(t0, seg, preferred_element_type=jnp.float32)
              + jnp.dot(t1, seg, preferred_element_type=jnp.float32)
              + jnp.dot(t2, seg, preferred_element_type=jnp.float32))
        ms = ss * (1.0 / d_model) + eps
    inv_rms = jax.lax.rsqrt(ms)  # EUP; broadcasts over lanes when pack == 1
    y = x * inv_rms * g_ref[...].astype(jnp.float32)
    o_ref[...] = y.astype(o_ref.dtype)


def _choose_tiling(rows_packed: int, lane_w: int, itemsize: int):
    """Pick (row_tile, num_tiles) for the 1-D grid."""
    # Sublane alignment by dtype packing (f32: 8, bf16: 16, int8/fp8: 32).
    align = 8 if itemsize >= 4 else (16 if itemsize == 2 else 32)
    row_bytes = lane_w * itemsize
    # Per-buffer target in the *input* dtype.  Scaled by dtype so that
    # 2x-in + 2x-out double buffers plus ~4 f32-sized temporaries stay under
    # ~52 MiB (safe for v7x's 64 MiB VMEM/TC, trivial on v5e/v6e).
    target_bytes = {4: 6 << 20, 2: 4 << 20}.get(itemsize, 2 << 20)
    min_bytes = 512 << 10  # below this per tile, per-step overhead dominates
    tr_cap = max(align, ((target_bytes // row_bytes) // align) * align)
    tr_min = max(align, ((min_bytes // row_bytes) // align) * align)

    if rows_packed <= 2 * tr_min:
        # Small input: one block covering the whole array.  A block shape
        # equal to the full array dims is always legal, even if unaligned.
        return rows_packed, 1

    # Enough steps for DMA/compute overlap (~4), never shrinking tiles below
    # the efficiency floor, and an even step count so the "parallel" axis
    # splits evenly across v7x's two TensorCores (harmless on v5e/v6e).
    nt = max(pl.cdiv(rows_packed, tr_cap), 4)
    nt = min(nt, max(2, rows_packed // tr_min))
    if nt % 2:
        nt += 1
    tr = _round_up(pl.cdiv(rows_packed, nt), align)
    nt = pl.cdiv(rows_packed, tr)
    if nt > 1 and nt % 2:  # alignment round-up can re-introduce an odd count
        tr_alt = _round_up(pl.cdiv(rows_packed, nt + 1), align)
        if pl.cdiv(rows_packed, tr_alt) % 2 == 0:
            tr, nt = tr_alt, pl.cdiv(rows_packed, tr_alt)
    return tr, nt


def rmsnorm(x: jax.Array, g: jax.Array, eps: float = 1e-5) -> jax.Array:
    """RMSNorm over the last axis of x. g has shape (d_model,)."""
    d_model = x.shape[-1]
    assert g.shape == (d_model,)
    orig_shape = x.shape
    orig_dtype = x.dtype

    rows = math.prod(orig_shape[:-1]) if len(orig_shape) > 1 else 1
    x2 = x.reshape(rows, d_model)

    # Lane-dense packing for small d_model: put `pack` logical rows into one
    # lane_w-wide physical row.  LCM-based so lane_w is a multiple of 128 even
    # when d_model does not divide 128 (unmasked full-lane stores).
    pack, lane_w = 1, d_model
    if d_model < 128:
        lcm_w = math.lcm(d_model, 128)
        if lcm_w <= 512:  # at most 4 vregs wide
            pack, lane_w = lcm_w // d_model, lcm_w
    itemsize = jnp.dtype(orig_dtype).itemsize

    # Only a tiny pad to a multiple of `pack` (nothing for the common case).
    rows_p = rows
    if rows % pack != 0:
        rows_p = _round_up(rows, pack)
        x2 = jnp.pad(x2, ((0, rows_p - rows), (0, 0)))
    rows_packed = rows_p // pack
    xp = x2.reshape(rows_packed, lane_w)  # free reshape (row-major contiguous)

    tr, num_tiles = _choose_tiling(rows_packed, lane_w, itemsize)

    g_packed = jnp.tile(g, pack).reshape(1, lane_w)

    inputs = [xp, g_packed]
    in_specs = [
        pl.BlockSpec((tr, lane_w), lambda i: (i, 0)),
        pl.BlockSpec((1, lane_w), lambda i: (0, 0)),
    ]
    seg_bytes = 0
    if pack > 1:
        lane_group = jnp.arange(lane_w, dtype=jnp.int32) // d_model
        seg = (lane_group[:, None] == lane_group[None, :]).astype(jnp.bfloat16)
        inputs.append(seg)
        in_specs.append(pl.BlockSpec((lane_w, lane_w), lambda i: (0, 0)))
        seg_bytes = 2 * lane_w * lane_w * 2  # double-buffered bf16 block

    # VMEM budget from the actual tile sizes: 2x-in + 2x-out double buffers,
    # ~4 f32-sized whole-tile temporaries, resident seg/g, plus margin.
    in_buf = tr * lane_w * itemsize
    f32_buf = tr * lane_w * 4
    vmem_limit = 4 * in_buf + 4 * f32_buf + seg_bytes + (2 << 20)
    vmem_limit = int(min(56 << 20, max(32 << 20, vmem_limit)))

    kernel = functools.partial(
        _rmsnorm_kernel, eps=float(eps), d_model=d_model, pack=pack
    )

    out = pl.pallas_call(
        kernel,
        out_shape=jax.ShapeDtypeStruct((rows_packed, lane_w), orig_dtype),
        grid_spec=pl.GridSpec(
            grid=(num_tiles,),
            in_specs=in_specs,
            out_specs=pl.BlockSpec((tr, lane_w), lambda i: (i, 0)),
        ),
        compiler_params=pltpu.CompilerParams(
            dimension_semantics=("parallel",),
            vmem_limit_bytes=vmem_limit,
        ),
    )(*inputs)

    out = out.reshape(rows_p, d_model)
    if rows_p != rows:
        out = out[:rows]
    return out.reshape(orig_shape)


if __name__ == "__main__":
    key = jax.random.PRNGKey(0)
    batch, seq, d_model = 2, 8, 32
    eps = 1e-5

    x = jax.random.normal(key, (batch, seq, d_model), dtype=jnp.float32)
    # Deterministic parameter init (module's __init__ uses ones(d_model)).
    g = jnp.ones((d_model,), dtype=jnp.float32)

    def ref(xi, gi, ei):
        x32 = xi.astype(jnp.float32)
        rms = jnp.sqrt(jnp.sum(x32 * x32, axis=-1) / xi.shape[-1] + ei)
        return (x32 / rms[..., None] * gi).astype(xi.dtype)

    y = jax.block_until_ready(rmsnorm(x, g, eps=eps))
    assert jnp.allclose(y, ref(x, g, eps), atol=1e-5, rtol=1e-5), \
        "mismatch vs reference"

    # Ragged row count (rows % pack != 0) exercises the tiny-pad + tail path.
    x2 = jax.random.normal(jax.random.PRNGKey(0), (3, 5, d_model),
                           dtype=jnp.float32)
    y2 = jax.block_until_ready(rmsnorm(x2, g, eps=eps))
    assert jnp.allclose(y2, ref(x2, g, eps), atol=1e-5, rtol=1e-5), \
        "mismatch vs reference (ragged rows)"

    print("KERNEL_OK")
</pallas_src>

<mosaic_0001>
module attributes {stable_mosaic.version = 11 : i64} {
  func.func @_rmsnorm_kernel(%arg0: i32, %arg1: memref<4x128xf32, #tpu.memory_space<vmem>>, %arg2: memref<1x128xf32, #tpu.memory_space<vmem>>, %arg3: memref<128x128xbf16, #tpu.memory_space<vmem>>, %arg4: memref<4x128xf32, #tpu.memory_space<vmem>>) attributes {dimension_semantics = [#tpu.dimension_semantics<parallel>], iteration_bounds = array<i64: 1>, scalar_prefetch = 0 : i64, scratch_operands = 0 : i64, tpu.core_type = #tpu.core_type<tc>, window_params = [{transform_indices = @transform_0, window_bounds = array<i64: 4, 128>}, {pipeline_mode = #tpu.pipeline_mode<synchronous>, transform_indices = @transform_1, window_bounds = array<i64: 1, 128>}, {pipeline_mode = #tpu.pipeline_mode<synchronous>, transform_indices = @transform_2, window_bounds = array<i64: 128, 128>}, {transform_indices = @transform_3, window_bounds = array<i64: 4, 128>}]} {
    %c0 = arith.constant 0 : index
    %c0_0 = arith.constant 0 : index
    %0 = vector.load %arg1[%c0, %c0_0] : memref<4x128xf32, #tpu.memory_space<vmem>>, vector<4x128xf32>
    %1 = arith.mulf %0, %0 : vector<4x128xf32>
    %c0_1 = arith.constant 0 : index
    %c0_2 = arith.constant 0 : index
    %2 = vector.load %arg3[%c0_1, %c0_2] : memref<128x128xbf16, #tpu.memory_space<vmem>>, vector<128x128xbf16>
    %3 = arith.truncf %1 : vector<4x128xf32> to vector<4x128xbf16>
    %4 = arith.extf %3 : vector<4x128xbf16> to vector<4x128xf32>
    %5 = arith.subf %1, %4 : vector<4x128xf32>
    %6 = arith.truncf %5 : vector<4x128xf32> to vector<4x128xbf16>
    %7 = arith.extf %6 : vector<4x128xbf16> to vector<4x128xf32>
    %8 = arith.subf %5, %7 : vector<4x128xf32>
    %9 = arith.truncf %8 : vector<4x128xf32> to vector<4x128xbf16>
    %cst = arith.constant dense<0.000000e+00> : vector<4x128xf32>
    %10 = tpu.matmul %3, %2, %cst {dimension_numbers = #tpu.dot_dimension_numbers<[1], [0], [0], [1], [0, 0, 1, 1], [], []>} : vector<4x128xbf16>, vector<128x128xbf16>, vector<4x128xf32> -> vector<4x128xf32>
    %cst_3 = arith.constant dense<0.000000e+00> : vector<4x128xf32>
    %11 = tpu.matmul %6, %2, %cst_3 {dimension_numbers = #tpu.dot_dimension_numbers<[1], [0], [0], [1], [0, 0, 1, 1], [], []>} : vector<4x128xbf16>, vector<128x128xbf16>, vector<4x128xf32> -> vector<4x128xf32>
    %12 = arith.addf %10, %11 : vector<4x128xf32>
    %cst_4 = arith.constant dense<0.000000e+00> : vector<4x128xf32>
    %13 = tpu.matmul %9, %2, %cst_4 {dimension_numbers = #tpu.dot_dimension_numbers<[1], [0], [0], [1], [0, 0, 1, 1], [], []>} : vector<4x128xbf16>, vector<128x128xbf16>, vector<4x128xf32> -> vector<4x128xf32>
    %14 = arith.addf %12, %13 : vector<4x128xf32>
    %cst_5 = arith.constant 3.125000e-02 : f32
    %15 = vector.broadcast %cst_5 : f32 to vector<4x128xf32>
    %16 = arith.mulf %14, %15 : vector<4x128xf32>
    %cst_6 = arith.constant 9.99999974E-6 : f32
    %17 = vector.broadcast %cst_6 : f32 to vector<4x128xf32>
    %18 = arith.addf %16, %17 : vector<4x128xf32>
    %19 = math.rsqrt %18 : vector<4x128xf32>
    %20 = arith.mulf %0, %19 : vector<4x128xf32>
    %c0_7 = arith.constant 0 : index
    %c0_8 = arith.constant 0 : index
    %21 = vector.load %arg2[%c0_7, %c0_8] : memref<1x128xf32, #tpu.memory_space<vmem>>, vector<1x128xf32>
    %22 = vector.broadcast %21 : vector<1x128xf32> to vector<4x128xf32>
    %23 = arith.mulf %20, %22 : vector<4x128xf32>
    %c0_9 = arith.constant 0 : index
    %c0_10 = arith.constant 0 : index
    %24 = vector.load %arg4[%c0_9, %c0_10] : memref<4x128xf32, #tpu.memory_space<vmem>>, vector<4x128xf32>
    tpu.vector_store %arg4[%c0_9, %c0_10], %23 {strides = array<i32>} : memref<4x128xf32, #tpu.memory_space<vmem>>, vector<4x128xf32>,
    return
  }
  func.func @transform_0(%arg0: i32) -> (i32, i32) {
    %c0_i32 = arith.constant 0 : i32
    %c0_i32_0 = arith.constant 0 : i32
    return %arg0, %c0_i32 : i32, i32
  }
  func.func @transform_1(%arg0: i32) -> (i32, i32) {
    %c0_i32 = arith.constant 0 : i32
    %c0_i32_0 = arith.constant 0 : i32
    %c0_i32_1 = arith.constant 0 : i32
    return %c0_i32, %c0_i32_0 : i32, i32
  }
  func.func @transform_2(%arg0: i32) -> (i32, i32) {
    %c0_i32 = arith.constant 0 : i32
    %c0_i32_0 = arith.constant 0 : i32
    %c0_i32_1 = arith.constant 0 : i32
    return %c0_i32, %c0_i32_0 : i32, i32
  }
  func.func @transform_3(%arg0: i32) -> (i32, i32) {
    %c0_i32 = arith.constant 0 : i32
    %c0_i32_0 = arith.constant 0 : i32
    return %arg0, %c0_i32 : i32, i32
  }
}

</mosaic_0001>

<bundles_post_ra>
// kernel: tpu_custom_call.1
= control target key start
LH: loop header
LB: loop body
LE: loop exit
PB: predicated region body
PF: predicated region fallthrough
CT: control target
= control target key end

     0   :  { %8 = vsyncpa [#allocation3], 0  ;;  %s563_s0 = inlined_call_operand.hbm [shape: f32[4,128], index: 0, kind: input, shape index: {}]   ;;  %s564_s1 = inlined_call_operand.vmem [shape: f32[1,128], index: 1, kind: input, shape index: {}]   ;;  %s565_s2 = inlined_call_operand.hbm [shape: bf16[128,128], index: 2, kind: input, shape index: {}]   ;;  %s566_s3 = inlined_call_operand.hbm [shape: f32[4,128], index: 3, kind: output, shape index: {}]  }
   0x1   :  { %9 = vsyncpa [#allocation6], 0 }
   0x2   :  { %10 = vsyncpa [#allocation4], 0  ;;  %s455_s12 = smov [#allocation2]   ;;  %s456_s14 = smov [#allocation5]  }
   0x3   :  { %s17_s13 = sshll.u32 %s455_s12, 4  ;;  %s28_s15 = sshll.u32 %s456_s14, 4  ;;  %s18_s13 = int_to_ptr.vmem [resolvable:$true] %s17_s13  ;;  %s482_s15 = int_to_ptr.vmem [resolvable:$true] %s28_s15 }
   0x4   :  { %s383_s18 = scalar_lea.hbm %s563_s0, 64 }
   0x5   :  { %p384_p0 = scmp.ne.s32.totalorder %s563_s0, %s383_s18  ;;  %p387_p1 = scmp.lt.u32.totalorder %s383_s18, %s563_s0 }
   0x7   :  { %p389_p2 = pnand %p387_p1, %p384_p0 }
   0x9   :  { %392 = shalt.err (!%p389_p2)
}
   0xa   :  { %s393_s23 = scalar_lea.vmem %s18_s13, 64  ;;  %p398_p4 = scmp.lt.s32.totalorder %s18_s13, %s18_s13 }
   0xb   :  { %p394_p3 = scmp.ne.s32.totalorder %s18_s13, %s393_s23  ;;  %p399_p5 = scmp.lt.s32.totalorder %s393_s23, %s393_s23 }
   0xd   :  { %p400_p6 = por %p399_p5, %p398_p4 }
   0xf   :  { %p401_p7 = pnand %p400_p6, %p394_p3 }
  0x11   :  { %404 = shalt.err (!%p401_p7)
}
  0x12   :  { %20 = dma.hbm_to_vmem [thread:$0]  %s563_s0, 64, %s18_s13, [#allocation3]  }
  0x13   :  { %s405_s28 = scalar_lea.hbm %s565_s2, 1024 }
  0x14   :  { %p406_p8 = scmp.ne.s32.totalorder %s565_s2, %s405_s28  ;;  %p409_p9 = scmp.lt.u32.totalorder %s405_s28, %s565_s2 }
  0x16   :  { %p411_p10 = pnand %p409_p9, %p406_p8 }
  0x18   :  { %414 = shalt.err (!%p411_p10)
}
  0x19   :  { %s415_s6 = scalar_lea.vmem %s482_s15, 1024  ;;  %p420_p12 = scmp.lt.s32.totalorder %s482_s15, %s482_s15 }
  0x1a   :  { %p416_p11 = scmp.ne.s32.totalorder %s482_s15, %s415_s6  ;;  %p421_p13 = scmp.lt.s32.totalorder %s415_s6, %s415_s6 }
  0x1c   :  { %p422_p0 = por %p421_p13, %p420_p12 }
  0x1e   :  { %p423_p1 = pnand %p422_p0, %p416_p11 }
  0x20   :  { %426 = shalt.err (!%p423_p1)
}
  0x21   :  { %s457_s0 = smov 64   ;;  %s458_s7 = smov 4  }
  0x22   :  { %34 = dma.hbm_to_vmem [thread:$0]  %s565_s2, 1024, %s482_s15, [#allocation6], %s457_s0, %s457_s0, %s458_s7  }
  0x23   :  { %449 = dma.done.wait [#allocation3], 64  }
  0x24   :  { %450 = vsyncadd [#allocation3], 4294967232 }
  0x25   :  { %451 = dma.done.wait [#allocation6], 1024  }
  0x26   :  { %452 = vsyncadd [#allocation6], 4294966272  ;;  %v459_v0 = vmov 0.0   ;;  %vm460_vm0 = vmmov 0   ;;  %v373_v1 = vld [vmem:[#allocation5] sm:$0xff]   ;;  %v374_v2 = vld [vmem:[#allocation5 + $0x8] sm:$0xff]  }
  0x27   :  { %321 = vmatprep.subr.bf16.mxu0 %v459_v0  ;;  %301 = vmatprep.subr.bf16.mxu1 %v459_v0  ;;  %v375_v3 = vld [vmem:[#allocation5 + $0x10] sm:$0xff]   ;;  %v376_v4 = vld [vmem:[#allocation5 + $0x18] sm:$0xff]   ;;  %v377_v5 = vld [vmem:[#allocation5 + $0x20] sm:$0xff]   ;;  %s461_s11 = smov [#allocation7]  }
  0x28   :  { %337 = vmatprep.mubr.msk.bf16.mxu0 %vm460_vm0, %v459_v0  ;;  %317 = vmatprep.mubr.msk.bf16.mxu1 %vm460_vm0, %v459_v0  ;;  %v525_v6 = vld [vmem:[#allocation2] sm:$0xf]  ;;  %v378_v8 = vld [vmem:[#allocation5 + $0x28] sm:$0xff]   ;;  %v379_v10 = vld [vmem:[#allocation5 + $0x30] sm:$0xff]   ;;  %s255_s12 = sshll.u32 %s461_s11, 4  ;;  %s256_s12 = int_to_ptr.vmem [resolvable:$true] %s255_s12 }
  0x29   :  { %322 = vmatpush3.bf16.msra.mxu0 %v373_v1  ;;  %302 = vmatpush3.bf16.msra.mxu1 %v373_v1  ;;  %v43_v7 = vmul.f32 %v525_v6, %v525_v6  ;;  %v380_v12 = vld [vmem:[#allocation5 + $0x38] sm:$0xff]   ;;  %s427_s13 = scalar_lea.vmem %s256_s12, 64  ;;  %p432_p3 = scmp.lt.s32.totalorder %s256_s12, %s256_s12 }
  0x2a   :  { %323 = vmatprep.subr.bf16.mxu0 %v459_v0  ;;  %303 = vmatprep.subr.bf16.mxu1 %v459_v0  ;;  %v273_v30 = vld [vmem:[%s564_s1] ss:$0 sm:$0xff]  ;;  %p428_p2 = scmp.ne.s32.totalorder %s256_s12, %s427_s13  ;;  %p433_p4 = scmp.lt.s32.totalorder %s427_s13, %s427_s13 }
  0x2b   :  { %v60_v9 = vpack.c.bf16 %v43_v7, %v43_v7 }
  0x2c   :  { %p434_p5 = por %p433_p4, %p432_p3 }
  0x2d   :  { %324 = vmatpush3.bf16.msra.mxu0 %v374_v2  ;;  %304 = vmatpush3.bf16.msra.mxu1 %v374_v2  ;;  %v61_v11 = vunpack.c.l.bf16 %v60_v9 }
  0x2e   :  { %325 = vmatprep.subr.bf16.mxu0 %v459_v0  ;;  %305 = vmatprep.subr.bf16.mxu1 %v459_v0  ;;  %p435_p6 = pnand %p434_p5, %p428_p2 }
  0x2f   :  { %v62_v13 = vsub.f32 %v43_v7, %v61_v11 }
  0x31   :  { %326 = vmatpush3.bf16.msra.mxu0 %v375_v3  ;;  %306 = vmatpush3.bf16.msra.mxu1 %v375_v3  ;;  %v63_v14 = vpack.c.bf16 %v62_v13, %v62_v13 }
  0x32   :  { %327 = vmatprep.subr.bf16.mxu0 %v459_v0  ;;  %307 = vmatprep.subr.bf16.mxu1 %v459_v0 }
  0x33   :  { %v64_v15 = vunpack.c.l.bf16 %v63_v14 }
  0x35   :  { %328 = vmatpush3.bf16.msra.mxu0 %v376_v4  ;;  %308 = vmatpush3.bf16.msra.mxu1 %v376_v4  ;;  %v65_v16 = vsub.f32 %v62_v13, %v64_v15 }
  0x36   :  { %329 = vmatprep.subr.bf16.mxu0 %v459_v0  ;;  %309 = vmatprep.subr.bf16.mxu1 %v459_v0 }
  0x37   :  { %v66_v17 = vpack.c.bf16 %v65_v16, %v65_v16 }
  0x39   :  { %330 = vmatpush3.bf16.msra.mxu0 %v377_v5  ;;  %310 = vmatpush3.bf16.msra.mxu1 %v377_v5 }
  0x3a   :  { %331 = vmatprep.subr.bf16.mxu0 %v459_v0  ;;  %311 = vmatprep.subr.bf16.mxu1 %v459_v0 }
  0x3d   :  { %332 = vmatpush3.bf16.msra.mxu0 %v378_v8  ;;  %312 = vmatpush3.bf16.msra.mxu1 %v378_v8 }
  0x3e   :  { %333 = vmatprep.subr.bf16.mxu0 %v459_v0  ;;  %313 = vmatprep.subr.bf16.mxu1 %v459_v0 }
  0x41   :  { %334 = vmatpush3.bf16.msra.mxu0 %v379_v10  ;;  %314 = vmatpush3.bf16.msra.mxu1 %v379_v10 }
  0x42   :  { %335 = vmatprep.subr.bf16.mxu0 %v459_v0  ;;  %315 = vmatprep.subr.bf16.mxu1 %v459_v0 }
  0x45   :  { %336 = vmatpush3.bf16.msra.mxu0 %v380_v12  ;;  %316 = vmatpush3.bf16.msra.mxu1 %v380_v12 }
  0x46   :  { %341 = vmatprep.subr.bf16.mxu0 %v459_v0 }
  0x48   :  { %338 = vmatmul.mubr.bf16.vlgmr.msra.gmra.mrb[0].mxu0 %v60_v9  ;;  %318 = vmatmul.mubr.bf16.vlgmr.msra.gmra.mrb[0].mxu1 %v63_v14 }
  0x49   :  { %342 = vmatpush3.bf16.msra.mxu0 %v373_v1  ;;  %357 = vmatprep.mubr.msk.bf16.mxu0 %vm460_vm0, %v459_v0 }
  0x4a   :  { %343 = vmatprep.subr.bf16.mxu0 %v459_v0 }
  0x4d   :  { %344 = vmatpush3.bf16.msra.mxu0 %v374_v2 }
  0x4e   :  { %345 = vmatprep.subr.bf16.mxu0 %v459_v0 }
  0x51   :  { %346 = vmatpush3.bf16.msra.mxu0 %v375_v3 }
  0x52   :  { %347 = vmatprep.subr.bf16.mxu0 %v459_v0 }
  0x55   :  { %348 = vmatpush3.bf16.msra.mxu0 %v376_v4 }
  0x56   :  { %349 = vmatprep.subr.bf16.mxu0 %v459_v0 }
  0x59   :  { %350 = vmatpush3.bf16.msra.mxu0 %v377_v5 }
  0x5a   :  { %351 = vmatprep.subr.bf16.mxu0 %v459_v0 }
  0x5d   :  { %352 = vmatpush3.bf16.msra.mxu0 %v378_v8 }
  0x5e   :  { %353 = vmatprep.subr.bf16.mxu0 %v459_v0 }
  0x61   :  { %354 = vmatpush3.bf16.msra.mxu0 %v379_v10 }
  0x62   :  { %355 = vmatprep.subr.bf16.mxu0 %v459_v0 }
  0x65   :  { %356 = vmatpush3.bf16.msra.mxu0 %v380_v12 }
  0x68   :  { %358 = vmatmul.mubr.bf16.vlgmr.msra.gmra.mrb[0].mxu0 %v66_v17 }
 0x11b   :  { %v149_v18 = vpop.f32.mrb[0].mxu1 }
 0x11c   :  { %v319_v19 = vpop.f32.mrb[1].mxu1 }
 0x11d   :  { %v152_v20 = vpop.f32.mrb[2].mxu1 }
 0x11e   :  { %v320_v21 = vpop.f32.mrb[3].mxu1 }
 0x13b   :  { %v229_v22 = vpop.f32.mrb[0].mxu0 }
 0x13c   :  { %v361_v23 = vadd.f32 %v229_v22, %v149_v18  ;;  %v359_v24 = vpop.f32.mrb[1].mxu0 }
 0x13d   :  { %v232_v25 = vpop.f32.mrb[2].mxu0 }
 0x13e   :  { %v236_v26 = vmul.f32 0.03125, %v361_v23  ;;  %v360_v27 = vpop.f32.mrb[3].mxu0 }
 0x140   :  { %v237_v28 = vadd.f32 1e-05, %v236_v26 }
 0x142   :  { %381 = vrsqrt.f32 %v237_v28 }
 0x14c   :  { %v382_v29 = vpop.eup %381 }
 0x14d   :  { %v239_v31 = vmul.f32 %v382_v29, %v525_v6 }
 0x14f   :  { %v247_v32 = vmul.f32 %v273_v30, %v239_v31 }
 0x151   :  { %248 = vst [vmem:[#allocation7] sm:$0xf] %v247_v32 }
 0x152   :  { %438 = shalt.err (!%p435_p6)
}
 0x153   :  { %s439_s16 = scalar_lea.hbm %s566_s3, 64 }
 0x154   :  { %p440_p7 = scmp.ne.s32.totalorder %s566_s3, %s439_s16  ;;  %p443_p8 = scmp.lt.u32.totalorder %s439_s16, %s566_s3 }
 0x156   :  { %p445_p9 = pnand %p443_p8, %p440_p7 }
 0x158   :  { %448 = shalt.err (!%p445_p9)
}
 0x159   :  { %258 = dma.vmem_to_hbm [thread:$0]  %s256_s12, 64, %s566_s3, [#allocation4]  }
 0x15a   :  { %453 = dma.done.wait [#allocation4], 64  }
 0x15b   :  { %454 = vsyncadd [#allocation4], 4294967232 }
 0x15c   :  { %262 = vsyncpa [#allocation3], 1 }
 0x15d   :  { %263 = vsyncpa [#allocation6], 1 }
 0x15e   :  { %264 = vsyncpa [#allocation4], 1 }

</bundles_post_ra>
